<compile_context>
chip_gen: v7x
topology: tpu7x:2x2x1
jax: 0.10.0
libtpu: 0.0.40
codegen_flags: <defaults>
</compile_context>

<pallas_src>
import jax
import jax.numpy as jnp
from jax.experimental import pallas as pl
from jax.experimental.pallas import tpu as pltpu

_LANES = 128


def _round_up(v, m):
    return (v + m - 1) // m * m


# --------------------------------------------------------------------------
# Kernel
# --------------------------------------------------------------------------
def _mlp_sigmoid_kernel(x_ref, w1_ref, b1_ref, w2_ref, b2_ref, o_ref):
    """Fused: sigmoid( relu(x @ W1 + b1) @ W2 + b2 ) for one batch row-tile."""
    # Layer 1: matching-dtype operands straight into the MXU, f32 accumulate.
    h = jnp.dot(x_ref[...], w1_ref[...], preferred_element_type=jnp.float32)
    h = jnp.maximum(h + b1_ref[...], 0.0)                      # bias + ReLU in f32
    # Layer 2 (lane-padded to exactly 128 cols): activations cast to the weight
    # dtype so bf16 weights keep the bf16 MXU path; f32 accumulate.
    # TODO(synk): keep h in f32 here if bit-closeness to the f32 reference matters
    # (the second matmul is tiny, so the cost would be negligible).
    logits = jnp.dot(h.astype(w2_ref.dtype), w2_ref[...],
                     preferred_element_type=jnp.float32)
    logits = logits + b2_ref[...]                               # f32 bias
    # Epilogue in f32 (exp on the EUP); cast only at the final lane-dense store.
    o_ref[...] = jax.nn.sigmoid(logits).astype(o_ref.dtype)


# --------------------------------------------------------------------------
# One-time parameter layout prep (hoisted out of the per-call path)
# --------------------------------------------------------------------------
def prepare_params(w1, b1, w2, b2):
    """Pad / cast parameters once (not per forward call).

    w1: (in_channels, hidden), w2: (hidden, num_labels) -- (in, out) layout,
    i.e. transposed vs. PyTorch nn.Linear's (out, in) weights.
    Returns (w1, b1_p, w2_p, b2_p); num_labels is recovered by the caller.
    """
    H, L = w2.shape
    assert L <= _LANES, "num_labels must fit in one lane tile"
    # Keep L_pad at exactly 128: already the minimum lane-dense width; never widen.
    w2_p = jnp.zeros((H, _LANES), w2.dtype).at[:, :L].set(w2)
    b2_p = jnp.zeros((1, _LANES), jnp.float32).at[:, :L].set(
        b2.astype(jnp.float32).reshape(1, -1))
    b1_p = b1.astype(jnp.float32).reshape(1, -1)
    return w1, b1_p, w2_p, b2_p


# --------------------------------------------------------------------------
# Row-tile selection
# --------------------------------------------------------------------------
def _pick_tb(B, block_b, x_dtype):
    """MXU-friendly row tile: >=2 grid steps when the batch allows (v7x megacore),
    sublane-packed for 16-bit inputs, never larger than one ragged batch tile."""
    sub = 16 if jnp.dtype(x_dtype).itemsize == 2 else 8
    if B > block_b:
        tb = _round_up(block_b, sub)          # e.g. 256 -> fills a 256-wide MXU
    elif B >= 2 * sub:
        tb = _round_up(-(-B // 2), sub)       # split into >=2 tiles for 2 TCs
    else:
        tb = _round_up(B, sub)
    return max(8, min(tb, _round_up(B, 8)))


# --------------------------------------------------------------------------
# Forward wrapper
# --------------------------------------------------------------------------
def multilabel_classification_head(x, w1, b1_p, w2_p, b2_p, *, num_labels,
                                   block_b=256, out_dtype=None):
    """sigmoid(relu(x @ W1 + b1) @ W2 + b2).

    x    : (B, in_channels)
    w1   : (in_channels, hidden)     (pre-transposed, from prepare_params)
    b1_p : (1, hidden) f32
    w2_p : (hidden, 128) lane-padded
    b2_p : (1, 128) f32
    Returns (B, num_labels).
    """
    B, C = x.shape
    H = w1.shape[1]
    L_pad = w2_p.shape[1]
    assert x.dtype == w1.dtype, (
        "x and W1 must share a dtype; mixed f32/bf16 silently drops the bf16 "
        "MXU path -- cast x (or W1) before calling.")
    out_dtype = x.dtype if out_dtype is None else out_dtype

    TB = _pick_tb(B, block_b, x.dtype)
    grid = (pl.cdiv(B, TB),)   # ragged last tile handled by Pallas; no x pad copy

    # Constant index_map -> these operands never change across grid steps, so a
    # single VMEM buffer suffices (frees VMEM for larger TB / deeper x buffering).
    resident = pl.Buffered(1)

    cost = pl.CostEstimate(
        flops=2 * B * (C * H + H * L_pad),
        transcendentals=B * L_pad,                      # sigmoid exp
        bytes_accessed=(x.size * x.dtype.itemsize
                        + w1.size * w1.dtype.itemsize
                        + w2_p.size * w2_p.dtype.itemsize
                        + b1_p.size * 4 + b2_p.size * 4
                        + B * L_pad * jnp.dtype(out_dtype).itemsize),
    )

    out = pl.pallas_call(
        _mlp_sigmoid_kernel,
        out_shape=jax.ShapeDtypeStruct((B, L_pad), out_dtype),
        grid_spec=pltpu.PrefetchScalarGridSpec(
            num_scalar_prefetch=0,
            grid=grid,
            in_specs=[
                pl.BlockSpec((TB, C), lambda i: (i, 0)),       # x row-tile (2-buf)
                pl.BlockSpec((C, H), lambda i: (0, 0),
                             pipeline_mode=resident),          # W1 resident
                pl.BlockSpec((1, H), lambda i: (0, 0),
                             pipeline_mode=resident),          # b1 resident
                pl.BlockSpec((H, L_pad), lambda i: (0, 0),
                             pipeline_mode=resident),          # W2 resident
                pl.BlockSpec((1, L_pad), lambda i: (0, 0),
                             pipeline_mode=resident),          # b2 resident
            ],
            out_specs=pl.BlockSpec((TB, L_pad), lambda i: (i, 0)),
        ),
        compiler_params=pltpu.CompilerParams(
            # Row tiles are independent -> shard across v7x's two TensorCores;
            # no-op on single-TC v5e/v6e.
            dimension_semantics=("parallel",),
        ),
        cost_estimate=cost,
    )(x, w1, b1_p, w2_p, b2_p)

    return out[:, :num_labels]


# --------------------------------------------------------------------------
# Parameter init (matches init_weights: normal(std=0.01), bias=0)
# --------------------------------------------------------------------------
def init_params(key, in_channels, hidden_dims, num_labels, dtype=jnp.float32):
    """Weights stored as (in, out), i.e. transposed vs. PyTorch's (out, in)."""
    dims = [in_channels, *hidden_dims, num_labels]
    params = []
    for i in range(len(dims) - 1):
        key, sub = jax.random.split(key)
        w = (0.01 * jax.random.normal(sub, (dims[i], dims[i + 1]))).astype(dtype)
        b = jnp.zeros((dims[i + 1],), dtype)
        params.append((w, b))
    return params


if __name__ == "__main__":
    # Small shapes consistent with the module (in_channels=2048 scaled down).
    batch = 8
    in_channels = 256
    hidden_dims = (128,)
    num_labels = 2

    key = jax.random.PRNGKey(0)
    key, xk = jax.random.split(key)
    x = jax.random.normal(xk, (batch, in_channels), dtype=jnp.float32)

    (w1, b1), (w2, b2) = init_params(key, in_channels, hidden_dims, num_labels)

    # --- f32 path (tight check) ---------------------------------------------
    # Layout prep done once, outside the per-call path.
    w1_f, b1_p, w2_p, b2_p = prepare_params(w1, b1, w2, b2)
    out = multilabel_classification_head(
        x, w1_f, b1_p, w2_p, b2_p, num_labels=num_labels)
    out = jax.block_until_ready(out)
    ref = jax.nn.sigmoid(jnp.maximum(x @ w1 + b1, 0.0) @ w2 + b2)
    assert out.shape == (batch, num_labels)
    assert jnp.allclose(out, ref, atol=1e-5, rtol=1e-5)

    # --- bf16 production path (halved x/W1 traffic + bf16 writeback) ---------
    xb = x.astype(jnp.bfloat16)
    w1b_f, b1b_p, w2b_p, b2b_p = prepare_params(
        w1.astype(jnp.bfloat16), b1, w2.astype(jnp.bfloat16), b2)
    out_bf = multilabel_classification_head(
        xb, w1b_f, b1b_p, w2b_p, b2b_p, num_labels=num_labels,
        out_dtype=jnp.bfloat16)
    out_bf = jax.block_until_ready(out_bf)
    ref_bf = jax.nn.sigmoid(
        jnp.maximum(xb.astype(jnp.float32) @ w1.astype(jnp.bfloat16).astype(jnp.float32)
                    + b1, 0.0)
        @ w2.astype(jnp.bfloat16).astype(jnp.float32) + b2)
    assert out_bf.shape == (batch, num_labels)
    assert jnp.allclose(out_bf.astype(jnp.float32), ref_bf, atol=2e-2, rtol=2e-2)

    print("KERNEL_OK")
</pallas_src>

<mosaic_0001>
module attributes {stable_mosaic.version = 11 : i64} {
  func.func @_mlp_sigmoid_kernel(%arg0: i32, %arg1: memref<8x256xf32, #tpu.memory_space<vmem>>, %arg2: memref<256x128xf32, #tpu.memory_space<vmem>>, %arg3: memref<1x128xf32, #tpu.memory_space<vmem>>, %arg4: memref<128x128xf32, #tpu.memory_space<vmem>>, %arg5: memref<1x128xf32, #tpu.memory_space<vmem>>, %arg6: memref<8x128xf32, #tpu.memory_space<vmem>>) attributes {dimension_semantics = [#tpu.dimension_semantics<parallel>], iteration_bounds = array<i64: 1>, scalar_prefetch = 0 : i64, scratch_operands = 0 : i64, tpu.core_type = #tpu.core_type<tc>, window_params = [{transform_indices = @transform_0, window_bounds = array<i64: 8, 256>}, {pipeline_mode = #tpu.pipeline_mode<synchronous>, transform_indices = @transform_1, window_bounds = array<i64: 256, 128>}, {pipeline_mode = #tpu.pipeline_mode<synchronous>, transform_indices = @transform_2, window_bounds = array<i64: 1, 128>}, {pipeline_mode = #tpu.pipeline_mode<synchronous>, transform_indices = @transform_3, window_bounds = array<i64: 128, 128>}, {pipeline_mode = #tpu.pipeline_mode<synchronous>, transform_indices = @transform_4, window_bounds = array<i64: 1, 128>}, {transform_indices = @transform_5, window_bounds = array<i64: 8, 128>}]} {
    %c0 = arith.constant 0 : index
    %c0_0 = arith.constant 0 : index
    %0 = vector.load %arg1[%c0, %c0_0] : memref<8x256xf32, #tpu.memory_space<vmem>>, vector<8x256xf32>
    %c0_1 = arith.constant 0 : index
    %c0_2 = arith.constant 0 : index
    %1 = vector.load %arg2[%c0_1, %c0_2] : memref<256x128xf32, #tpu.memory_space<vmem>>, vector<256x128xf32>
    %cst = arith.constant dense<0.000000e+00> : vector<8x128xf32>
    %2 = tpu.matmul %0, %1, %cst {dimension_numbers = #tpu.dot_dimension_numbers<[1], [0], [0], [1], [0, 0, 1, 1], [], []>} : vector<8x256xf32>, vector<256x128xf32>, vector<8x128xf32> -> vector<8x128xf32>
    %c0_3 = arith.constant 0 : index
    %c0_4 = arith.constant 0 : index
    %3 = vector.load %arg3[%c0_3, %c0_4] : memref<1x128xf32, #tpu.memory_space<vmem>>, vector<1x128xf32>
    %4 = vector.broadcast %3 : vector<1x128xf32> to vector<8x128xf32>
    %5 = arith.addf %2, %4 : vector<8x128xf32>
    %cst_5 = arith.constant 0.000000e+00 : f32
    %6 = vector.broadcast %cst_5 : f32 to vector<8x128xf32>
    %7 = arith.maximumf %5, %6 : vector<8x128xf32>
    %c0_6 = arith.constant 0 : index
    %c0_7 = arith.constant 0 : index
    %8 = vector.load %arg4[%c0_6, %c0_7] : memref<128x128xf32, #tpu.memory_space<vmem>>, vector<128x128xf32>
    %cst_8 = arith.constant dense<0.000000e+00> : vector<8x128xf32>
    %9 = tpu.matmul %7, %8, %cst_8 {dimension_numbers = #tpu.dot_dimension_numbers<[1], [0], [0], [1], [0, 0, 1, 1], [], []>} : vector<8x128xf32>, vector<128x128xf32>, vector<8x128xf32> -> vector<8x128xf32>
    %c0_9 = arith.constant 0 : index
    %c0_10 = arith.constant 0 : index
    %10 = vector.load %arg5[%c0_9, %c0_10] : memref<1x128xf32, #tpu.memory_space<vmem>>, vector<1x128xf32>
    %11 = vector.broadcast %10 : vector<1x128xf32> to vector<8x128xf32>
    %12 = arith.addf %9, %11 : vector<8x128xf32>
    %13 = arith.negf %12 : vector<8x128xf32>
    %14 = math.exp %13 : vector<8x128xf32>
    %cst_11 = arith.constant 1.000000e+00 : f32
    %15 = vector.broadcast %cst_11 : f32 to vector<8x128xf32>
    %16 = arith.addf %15, %14 : vector<8x128xf32>
    %17 = arith.divf %15, %16 : vector<8x128xf32>
    %c0_12 = arith.constant 0 : index
    %c0_13 = arith.constant 0 : index
    %18 = vector.load %arg6[%c0_12, %c0_13] : memref<8x128xf32, #tpu.memory_space<vmem>>, vector<8x128xf32>
    tpu.vector_store %arg6[%c0_12, %c0_13], %17 {strides = array<i32>} : memref<8x128xf32, #tpu.memory_space<vmem>>, vector<8x128xf32>,
    return
  }
  func.func @transform_0(%arg0: i32) -> (i32, i32) {
    %c0_i32 = arith.constant 0 : i32
    %c0_i32_0 = arith.constant 0 : i32
    return %arg0, %c0_i32 : i32, i32
  }
  func.func @transform_1(%arg0: i32) -> (i32, i32) {
    %c0_i32 = arith.constant 0 : i32
    %c0_i32_0 = arith.constant 0 : i32
    %c0_i32_1 = arith.constant 0 : i32
    return %c0_i32, %c0_i32_0 : i32, i32
  }
  func.func @transform_2(%arg0: i32) -> (i32, i32) {
    %c0_i32 = arith.constant 0 : i32
    %c0_i32_0 = arith.constant 0 : i32
    %c0_i32_1 = arith.constant 0 : i32
    return %c0_i32, %c0_i32_0 : i32, i32
  }
  func.func @transform_3(%arg0: i32) -> (i32, i32) {
    %c0_i32 = arith.constant 0 : i32
    %c0_i32_0 = arith.constant 0 : i32
    %c0_i32_1 = arith.constant 0 : i32
    return %c0_i32, %c0_i32_0 : i32, i32
  }
  func.func @transform_4(%arg0: i32) -> (i32, i32) {
    %c0_i32 = arith.constant 0 : i32
    %c0_i32_0 = arith.constant 0 : i32
    %c0_i32_1 = arith.constant 0 : i32
    return %c0_i32, %c0_i32_0 : i32, i32
  }
  func.func @transform_5(%arg0: i32) -> (i32, i32) {
    %c0_i32 = arith.constant 0 : i32
    %c0_i32_0 = arith.constant 0 : i32
    return %arg0, %c0_i32 : i32, i32
  }
}

</mosaic_0001>

<bundles_post_ra>
// kernel: tpu_custom_call.1
= control target key start
LH: loop header
LB: loop body
LE: loop exit
PB: predicated region body
PF: predicated region fallthrough
CT: control target
= control target key end

     0   :  { %10 = vsyncpa [#allocation3], 0  ;;  %s648_s0 = inlined_call_operand.hbm [shape: f32[8,256], index: 0, kind: input, shape index: {}]   ;;  %s649_s1 = inlined_call_operand.hbm [shape: f32[256,128], index: 1, kind: input, shape index: {}]   ;;  %s650_s2 = inlined_call_operand.vmem [shape: f32[1,128], index: 2, kind: input, shape index: {}]   ;;  %s651_s3 = inlined_call_operand.hbm [shape: f32[128,128], index: 3, kind: input, shape index: {}]   ;;  %s652_s4 = inlined_call_operand.vmem [shape: f32[1,128], index: 4, kind: input, shape index: {}]   ;;  %s653_s5 = inlined_call_operand.hbm [shape: f32[8,128], index: 5, kind: output, shape index: {}]  }
   0x1   :  { %11 = vsyncpa [#allocation6], 0 }
   0x2   :  { %12 = vsyncpa [#allocation4], 0  ;;  %s541_s18 = smov [#allocation5]   ;;  %s447_s22 = scalar_lea.hbm %s649_s1, 4096 }
   0x3   :  { %s28_s19 = sshll.u32 %s541_s18, 4  ;;  %p448_p0 = scmp.ne.s32.totalorder %s649_s1, %s447_s22  ;;  %s29_s19 = int_to_ptr.vmem [resolvable:$true] %s28_s19 }
   0x4   :  { %p451_p1 = scmp.lt.u32.totalorder %s447_s22, %s649_s1 }
   0x6   :  { %p453_p2 = pnand %p451_p1, %p448_p0 }
   0x8   :  { %456 = shalt.err (!%p453_p2)
}
   0x9   :  { %s457_s27 = scalar_lea.vmem %s29_s19, 4096  ;;  %p462_p4 = scmp.lt.s32.totalorder %s29_s19, %s29_s19 }
   0xa   :  { %p458_p3 = scmp.ne.s32.totalorder %s29_s19, %s457_s27  ;;  %p463_p5 = scmp.lt.s32.totalorder %s457_s27, %s457_s27 }
   0xc   :  { %p464_p6 = por %p463_p5, %p462_p4 }
   0xe   :  { %p465_p7 = pnand %p464_p6, %p458_p3 }
  0x10   :  { %468 = shalt.err (!%p465_p7)
}
  0x11   :  { %s542_s28 = smov 128   ;;  %s543_s29 = smov 8  }
  0x12   :  { %34 = dma.hbm_to_vmem [thread:$0]  %s649_s1, 4096, %s29_s19, [#allocation6], %s542_s28, %s542_s28, %s543_s29  }
  0x13   :  { %s544_s7 = smov [#allocation2]   ;;  %s545_s9 = smov [#allocation7]  }
  0x14   :  { %s19_s8 = sshll.u32 %s544_s7, 4  ;;  %s42_s10 = sshll.u32 %s545_s9, 4  ;;  %s20_s8 = int_to_ptr.vmem [resolvable:$true] %s19_s8  ;;  %s43_s10 = int_to_ptr.vmem [resolvable:$true] %s42_s10 }
  0x15   :  { %s469_s13 = scalar_lea.hbm %s648_s0, 256 }
  0x16   :  { %p470_p8 = scmp.ne.s32.totalorder %s648_s0, %s469_s13  ;;  %p473_p9 = scmp.lt.u32.totalorder %s469_s13, %s648_s0 }
  0x18   :  { %p475_p10 = pnand %p473_p9, %p470_p8 }
  0x1a   :  { %478 = shalt.err (!%p475_p10)
}
  0x1b   :  { %s479_s1 = scalar_lea.vmem %s20_s8, 256  ;;  %p484_p12 = scmp.lt.s32.totalorder %s20_s8, %s20_s8 }
  0x1c   :  { %p480_p11 = scmp.ne.s32.totalorder %s20_s8, %s479_s1  ;;  %p485_p13 = scmp.lt.s32.totalorder %s479_s1, %s479_s1 }
  0x1e   :  { %p486_p0 = por %p485_p13, %p484_p12 }
  0x20   :  { %p487_p1 = pnand %p486_p0, %p480_p11 }
  0x22   :  { %490 = shalt.err (!%p487_p1)
}
  0x23   :  { %22 = dma.hbm_to_vmem [thread:$0]  %s648_s0, 256, %s20_s8, [#allocation3]  }
  0x24   :  { %s491_s22 = scalar_lea.hbm %s651_s3, 2048 }
  0x25   :  { %p492_p2 = scmp.ne.s32.totalorder %s651_s3, %s491_s22  ;;  %p495_p3 = scmp.lt.u32.totalorder %s491_s22, %s651_s3 }
  0x27   :  { %p497_p4 = pnand %p495_p3, %p492_p2 }
  0x29   :  { %500 = shalt.err (!%p497_p4)
}
  0x2a   :  { %s501_s27 = scalar_lea.vmem %s43_s10, 2048  ;;  %p506_p6 = scmp.lt.s32.totalorder %s43_s10, %s43_s10 }
  0x2b   :  { %p502_p5 = scmp.ne.s32.totalorder %s43_s10, %s501_s27  ;;  %p507_p7 = scmp.lt.s32.totalorder %s501_s27, %s501_s27 }
  0x2d   :  { %p508_p8 = por %p507_p7, %p506_p6 }
  0x2f   :  { %p509_p9 = pnand %p508_p8, %p502_p5 }
  0x31   :  { %512 = shalt.err (!%p509_p9)
}
  0x32   :  { %48 = dma.hbm_to_vmem [thread:$0]  %s651_s3, 2048, %s43_s10, [#allocation6], %s542_s28, %s542_s28, %s543_s29  }
  0x33   :  { %535 = dma.done.wait [#allocation3], 256  }
  0x34   :  { %536 = vsyncadd [#allocation3], 4294967040 }
  0x35   :  { %537 = dma.done.wait [#allocation6], 6144  }
  0x36   :  { %538 = vsyncadd [#allocation6], 4294961152  ;;  %v546_v0 = vmov 0.0|0.0   ;;  %v78_v1 = vld [vmem:[#allocation5 + $0x80] sm:$0xff]  ;;  %v79_v2 = vld [vmem:[#allocation5 + $0x88] sm:$0xff]  ;;  %vm547_vm0 = vmmov 0  }
  0x37   :  { %410 = vmatprep.subr.bf16.mxu1 %v546_v0  ;;  %v62_v3 = vld [vmem:[#allocation5] sm:$0xff]  ;;  %v378_v4 = vpack.c.bf16 %v79_v2, %v78_v1  ;;  %v63_v5 = vld [vmem:[#allocation5 + $0x8] sm:$0xff]  ;;  %v80_v6 = vld [vmem:[#allocation5 + $0x90] sm:$0xff]  ;;  %s549_s7 = smov [#allocation8]  }
  0x38   :  { %v81_v7 = vld [vmem:[#allocation5 + $0x98] sm:$0xff]  ;;  %v380_v8 = vpack.c.bf16 %v63_v5, %v62_v3  ;;  %v64_v10 = vld [vmem:[#allocation5 + $0x10] sm:$0xff]  ;;  %v82_v12 = vld [vmem:[#allocation5 + $0xa0] sm:$0xff]  ;;  %s278_s8 = sshll.u32 %s549_s7, 4  ;;  %s279_s8 = int_to_ptr.vmem [resolvable:$true] %s278_s8 }
  0x39   :  { %v382_v9 = vpack.c.bf16 %v81_v7, %v80_v6  ;;  %v65_v11 = vld [vmem:[#allocation5 + $0x18] sm:$0xff]  ;;  %379 = vmatprep.subr.bf16.mxu0 %v378_v4  ;;  %v83_v13 = vld [vmem:[#allocation5 + $0xa8] sm:$0xff]  ;;  %v66_v16 = vld [vmem:[#allocation5 + $0x20] sm:$0xff]  ;;  %p518_p11 = scmp.lt.s32.totalorder %s279_s8, %s279_s8 }
  0x3a   :  { %381 = vmatpush3.bf16.msra.mxu0 %v380_v8  ;;  %v384_v14 = vpack.c.bf16 %v65_v11, %v64_v10  ;;  %v386_v15 = vpack.c.bf16 %v83_v13, %v82_v12  ;;  %v67_v17 = vld [vmem:[#allocation5 + $0x28] sm:$0xff]  ;;  %v84_v18 = vld [vmem:[#allocation5 + $0xb0] sm:$0xff]  ;;  %v85_v19 = vld [vmem:[#allocation5 + $0xb8] sm:$0xff]  ;;  %v548_v12 = vmov 0.0  }
  0x3b   :  { %383 = vmatprep.subr.bf16.mxu0 %v382_v9  ;;  %v388_v20 = vpack.c.bf16 %v67_v17, %v66_v16  ;;  %v390_v21 = vpack.c.bf16 %v85_v19, %v84_v18  ;;  %v68_v22 = vld [vmem:[#allocation5 + $0x30] sm:$0xff]  ;;  %v69_v23 = vld [vmem:[#allocation5 + $0x38] sm:$0xff]  ;;  %v86_v24 = vld [vmem:[#allocation5 + $0xc0] sm:$0xff]  ;;  %375 = vmatprep.mubr.msk.f32.mxu1 %vm547_vm0, %v548_v12 }
  0x3c   :  { %v87_v25 = vld [vmem:[#allocation5 + $0xc8] sm:$0xff]  ;;  %v61_v26 = vld [vmem:[#allocation2 + $0x8] sm:$0xff]  ;;  %v172_v27 = vld [vmem:[#allocation7] sm:$0xff]  ;;  %v392_v29 = vpack.c.bf16 %v69_v23, %v68_v22 }
  0x3d   :  { %165 = vmatprep.mubr.f32.mxu0 %v61_v26  ;;  %v173_v28 = vld [vmem:[#allocation7 + $0x8] sm:$0xff]  ;;  %v174_v31 = vld [vmem:[#allocation7 + $0x10] sm:$0xff]  ;;  %v175_v32 = vld [vmem:[#allocation7 + $0x18] sm:$0xff]  ;;  %v394_v33 = vpack.c.bf16 %v87_v25, %v86_v24 }
  0x3e   :  { %385 = vmatpush3.bf16.msra.mxu0 %v384_v14  ;;  %v411_v30 = vpack.c.bf16 %v173_v28, %v172_v27  ;;  %v70_v34 = vld [vmem:[#allocation5 + $0x40] sm:$0xff]  ;;  %v71_v35 = vld [vmem:[#allocation5 + $0x48] sm:$0xff]  ;;  %v88_v36 = vld [vmem:[#allocation5 + $0xd0] sm:$0xff]  ;;  %v414_v38 = vpack.c.bf16 %v175_v32, %v174_v31 }
  0x3f   :  { %387 = vmatprep.subr.bf16.mxu0 %v386_v15  ;;  %v89_v37 = vld [vmem:[#allocation5 + $0xd8] sm:$0xff]  ;;  %v176_v39 = vld [vmem:[#allocation7 + $0x20] sm:$0xff]  ;;  %v177_v40 = vld [vmem:[#allocation7 + $0x28] sm:$0xff]  ;;  %v396_v41 = vpack.c.bf16 %v71_v35, %v70_v34 }
  0x40   :  { %412 = vmatpush3.bf16.msra.mxu1 %v411_v30  ;;  %v398_v42 = vpack.c.bf16 %v89_v37, %v88_v36  ;;  %v72_v43 = vld [vmem:[#allocation5 + $0x50] sm:$0xff]  ;;  %v73_v44 = vld [vmem:[#allocation5 + $0x58] sm:$0xff]  ;;  %v90_v45 = vld [vmem:[#allocation5 + $0xe0] sm:$0xff]  ;;  %v417_v47 = vpack.c.bf16 %v177_v40, %v176_v39 }
  0x41   :  { %413 = vmatprep.subr.bf16.mxu1 %v546_v0  ;;  %v91_v46 = vld [vmem:[#allocation5 + $0xe8] sm:$0xff]  ;;  %v178_v48 = vld [vmem:[#allocation7 + $0x30] sm:$0xff]  ;;  %v179_v49 = vld [vmem:[#allocation7 + $0x38] sm:$0xff]  ;;  %v400_v50 = vpack.c.bf16 %v73_v44, %v72_v43 }
  0x42   :  { %389 = vmatpush3.bf16.msra.mxu0 %v388_v20  ;;  %v402_v51 = vpack.c.bf16 %v91_v46, %v90_v45  ;;  %v74_v52 = vld [vmem:[#allocation5 + $0x60] sm:$0xff]  ;;  %v75_v53 = vld [vmem:[#allocation5 + $0x68] sm:$0xff]  ;;  %v92_v54 = vld [vmem:[#allocation5 + $0xf0] sm:$0xff]  ;;  %v420_v56 = vpack.c.bf16 %v179_v49, %v178_v48 }
  0x43   :  { %391 = vmatprep.subr.bf16.mxu0 %v390_v21  ;;  %v93_v55 = vld [vmem:[#allocation5 + $0xf8] sm:$0xff]  ;;  %v180_v57 = vld [vmem:[#allocation7 + $0x40] sm:$0xff]  ;;  %v181_v58 = vld [vmem:[#allocation7 + $0x48] sm:$0xff]  ;;  %v404_v59 = vpack.c.bf16 %v75_v53, %v74_v52 }
  0x44   :  { %415 = vmatpush3.bf16.msra.mxu1 %v414_v38  ;;  %v406_v60 = vpack.c.bf16 %v93_v55, %v92_v54  ;;  %v76_v61 = vld [vmem:[#allocation5 + $0x70] sm:$0xff]  ;;  %v77_v62 = vld [vmem:[#allocation5 + $0x78] sm:$0xff]  ;;  %v423_v63 = vpack.c.bf16 %v181_v58, %v180_v57  ;;  %v184_v6 = vld [vmem:[#allocation7 + $0x60] sm:$0xff] }
  0x45   :  { %416 = vmatprep.subr.bf16.mxu1 %v546_v0  ;;  %v182_v1 = vld [vmem:[#allocation7 + $0x50] sm:$0xff]  ;;  %v183_v2 = vld [vmem:[#allocation7 + $0x58] sm:$0xff]  ;;  %v408_v3 = vpack.c.bf16 %v77_v62, %v76_v61  ;;  %v185_v7 = vld [vmem:[#allocation7 + $0x68] sm:$0xff] }
  0x46   :  { %393 = vmatpush3.bf16.msra.mxu0 %v392_v29  ;;  %v426_v4 = vpack.c.bf16 %v183_v2, %v182_v1  ;;  %v60_v5 = vld [vmem:[#allocation2] sm:$0xff]  ;;  %v429_v8 = vpack.c.bf16 %v185_v7, %v184_v6  ;;  %v187_v10 = vld [vmem:[#allocation7 + $0x78] sm:$0xff] }
  0x47   :  { %395 = vmatprep.subr.bf16.mxu0 %v394_v33  ;;  %v186_v9 = vld [vmem:[#allocation7 + $0x70] sm:$0xff] }
  0x48   :  { %418 = vmatpush3.bf16.msra.mxu1 %v417_v47  ;;  %v432_v11 = vpack.c.bf16 %v187_v10, %v186_v9  ;;  %v288_v14 = vld [vmem:[%s650_s2] ss:$0 sm:$0xff]  ;;  %s513_s2 = scalar_lea.vmem %s279_s8, 128 }
  0x49   :  { %419 = vmatprep.subr.bf16.mxu1 %v546_v0  ;;  %p514_p10 = scmp.ne.s32.totalorder %s279_s8, %s513_s2  ;;  %p519_p12 = scmp.lt.s32.totalorder %s513_s2, %s513_s2 }
  0x4a   :  { %397 = vmatpush3.bf16.msra.mxu0 %v396_v41 }
  0x4b   :  { %399 = vmatprep.subr.bf16.mxu0 %v398_v42  ;;  %p520_p13 = por %p519_p12, %p518_p11 }
  0x4c   :  { %421 = vmatpush3.bf16.msra.mxu1 %v420_v56 }
  0x4d   :  { %422 = vmatprep.subr.bf16.mxu1 %v546_v0  ;;  %p521_p0 = pnand %p520_p13, %p514_p10 }
  0x4e   :  { %401 = vmatpush3.bf16.msra.mxu0 %v400_v50 }
  0x4f   :  { %403 = vmatprep.subr.bf16.mxu0 %v402_v51 }
  0x50   :  { %424 = vmatpush3.bf16.msra.mxu1 %v423_v63 }
  0x51   :  { %425 = vmatprep.subr.bf16.mxu1 %v546_v0 }
  0x52   :  { %405 = vmatpush3.bf16.msra.mxu0 %v404_v59 }
  0x53   :  { %407 = vmatprep.subr.bf16.mxu0 %v406_v60 }
  0x54   :  { %427 = vmatpush3.bf16.msra.mxu1 %v426_v4 }
  0x55   :  { %428 = vmatprep.subr.bf16.mxu1 %v546_v0 }
  0x56   :  { %409 = vmatpush3.bf16.msra.mxu0 %v408_v3 }
  0x58   :  { %430 = vmatpush3.bf16.msra.mxu1 %v429_v8 }
  0x59   :  { %166 = vmatmul.mubr.f32.vlgmr.msra.gmra.mrb[0].mxu0 %v60_v5  ;;  %431 = vmatprep.subr.bf16.mxu1 %v546_v0  ;;  %v289_v0 = vld [vmem:[%s652_s4] ss:$0 sm:$0xff] }
  0x5c   :  { %433 = vmatpush3.bf16.msra.mxu1 %v432_v11 }
 0x12c   :  { %v323_v13 = vpop.f32.mrb[0].mxu0 }
 0x12d   :  { %v324_v15 = vpop.f32.mrb[1].mxu0 }
 0x12e   :  { %v325_v16 = vadd.f32 %v324_v15, %v323_v13 }
 0x130   :  { %v168_v17 = vadd.f32 %v325_v16, %v288_v14 }
 0x132   :  { %v171_v18 = vmax.f32 %v168_v17, 0.0 }
 0x134   :  { %376 = vmatmul.mubr.f32.vlgmr.msra.gmra.mrb[0].mxu1 %v171_v18 }
 0x207   :  { %v261_v19 = vpop.f32.mrb[0].mxu1 }
 0x208   :  { %v262_v20 = vadd.f32 %v289_v0, %v261_v19  ;;  %v377_v21 = vpop.f32.mrb[1].mxu1 }
 0x20a   :  { %v290_v22 = vmul.f32 -1.442695, %v262_v20 }
 0x20c   :  { %443 = vpow2.f32 %v290_v22 }
 0x216   :  { %v444_v23 = vpop.eup %443 }
 0x217   :  { %v268_v24 = vadd.f32 1.0, %v444_v23 }
 0x219   :  { %445 = vrcp.f32 %v268_v24 }
 0x223   :  { %v446_v25 = vpop.eup %445 }
 0x224   :  { %271 = vst [vmem:[#allocation8] sm:$0xff] %v446_v25 }
 0x225   :  { %524 = shalt.err (!%p521_p0)
}
 0x226   :  { %s525_s10 = scalar_lea.hbm %s653_s5, 128 }
 0x227   :  { %p526_p1 = scmp.ne.s32.totalorder %s653_s5, %s525_s10  ;;  %p529_p2 = scmp.lt.u32.totalorder %s525_s10, %s653_s5 }
 0x229   :  { %p531_p3 = pnand %p529_p2, %p526_p1 }
 0x22b   :  { %534 = shalt.err (!%p531_p3)
}
 0x22c   :  { %281 = dma.vmem_to_hbm [thread:$0]  %s279_s8, 128, %s653_s5, [#allocation4]  }
 0x22d   :  { %539 = dma.done.wait [#allocation4], 128  }
 0x22e   :  { %540 = vsyncadd [#allocation4], 4294967168 }
 0x22f   :  { %285 = vsyncpa [#allocation3], 1 }
 0x230   :  { %286 = vsyncpa [#allocation6], 1 }
 0x231   :  { %287 = vsyncpa [#allocation4], 1 }

</bundles_post_ra>
